<compile_context>
chip_gen: v6e
topology: v6e:2x2x1
jax: 0.10.0
libtpu: 0.0.40
codegen_flags: <defaults>
</compile_context>

<pallas_src>
import jax
import jax.numpy as jnp
from jax.experimental import pallas as pl
from jax.experimental.pallas import tpu as pltpu


def meanpool_fc_kernel(h_ref, m_ref, w_ref, b_ref, o_ref, sum_emb, sum_mask):
    """One grid point (b_idx, s_idx): accumulate masked sums over a seq tile.

    h_ref:    (tile_b, tile_s, H)  hidden states, native dtype (bf16/f32)
    m_ref:    (tile_b, 1, tile_s)  bf16 attention mask (0/1)
    w_ref:    (H, n_out)           f32 fc weight, pre-transposed
    b_ref:    (1, n_out)           f32 fc bias
    o_ref:    (tile_b, 1, n_out)   f32 logits (written on the last seq tile)
    sum_emb:  (tile_b, 1, H)       f32 scratch accumulator
    sum_mask: (tile_b, 1, 1)       f32 scratch accumulator
    """
    s_idx = pl.program_id(1)

    @pl.when(s_idx == 0)
    def _():
        sum_emb[...] = jnp.zeros_like(sum_emb)
        sum_mask[...] = jnp.zeros_like(sum_mask)

    h = h_ref[...]                       # native dtype (bf16 or f32)
    m = m_ref[...]                       # (tile_b, 1, tile_s) bf16

    # Masked reduction over the sequence on the MXU: per-batch (1,s)@(s,H),
    # f32 accumulation in VMEM scratch. 0/1 mask values are exact in bf16.
    sum_emb[...] += jnp.einsum('bqs,bsh->bqh', m.astype(h.dtype), h,
                               preferred_element_type=jnp.float32)
    sum_mask[...] += jnp.sum(m.astype(jnp.float32), axis=2, keepdims=True)

    @pl.when(s_idx == pl.num_programs(1) - 1)
    def _():
        denom = jnp.maximum(sum_mask[...], 1e-9)          # torch.clamp(min=1e-9)
        mean_emb = (sum_emb[...] / denom)[:, 0, :]        # (tile_b, H)
        logits = jnp.dot(mean_emb, w_ref[...],
                         preferred_element_type=jnp.float32) + b_ref[...]
        o_ref[...] = logits[:, None, :]


def custom_model_forward(last_hidden_state, attention_mask, fc_weight, fc_bias,
                         *, max_tile_b=None, max_tile_s=None):
    """Pallas wrapper matching CustomModel.forward given backbone outputs.

    last_hidden_state: (B, S, H) float (bf16 or f32 -- streamed in native dtype)
    attention_mask:    (B, S)    int/float 0-1 mask
    fc_weight:         (n_out, H)
    fc_bias:           (n_out,)
    returns:           (B, n_out) float32
    """
    B, S, H = last_hidden_state.shape
    n_out = fc_weight.shape[0]

    h = last_hidden_state                                   # keep native dtype
    mask = attention_mask.astype(jnp.bfloat16)[:, None, :]  # (B, 1, S), feeds MXU directly
    w_t = fc_weight.astype(jnp.float32).T                   # (H, n_out)
    bias = fc_bias.astype(jnp.float32).reshape(1, n_out)

    itemsize = jnp.dtype(h.dtype).itemsize

    # ---- per-generation VMEM budget ----
    try:
        info = pltpu.get_tpu_info()
        vmem_cap = int(getattr(info, "vmem_capacity_bytes", 64 << 20))
    except Exception:  # pragma: no cover - conservative fallback
        vmem_cap = 64 << 20
    h_budget = int(0.6 * vmem_cap)       # for the two double-buffered h tiles

    # ---- tile sizes: exact divisors of B / S (no activation padding) ----
    # h block last-two dims are (tile_s, H): tile_s must be %8 or == S; H is full.
    # mask block last-two dims are (1, tile_s): tile_s must be %128 or == S.
    b_divs = sorted(d for d in range(1, B + 1) if B % d == 0)
    s_cands = sorted(d for d in range(1, S + 1)
                     if S % d == 0 and (d % 128 == 0 or d == S))
    if max_tile_b is not None:
        b_divs = [d for d in b_divs if d <= max_tile_b] or b_divs[:1]
    if max_tile_s is not None:
        s_cands = [d for d in s_cands if d <= max_tile_s] or s_cands[:1]

    def h_tiles_bytes(tb, ts):
        return 2 * tb * ts * H * itemsize      # double-buffered hidden-state tiles

    tb_pref = 16 if itemsize <= 2 else 8       # full sublane packing per dtype
    tile_b = max([d for d in b_divs if d <= tb_pref] or [b_divs[0]])
    # If B has no decent small divisor (e.g. prime), take the whole batch per
    # tile when it fits the budget at the smallest seq tile.
    if tile_b < min(8, B) and h_tiles_bytes(b_divs[-1], s_cands[0]) <= h_budget:
        tile_b = b_divs[-1]
    # Shrink tile_b if even the smallest seq tile blows the budget.
    while tile_b > b_divs[0] and h_tiles_bytes(tile_b, s_cands[0]) > h_budget:
        tile_b = max(d for d in b_divs if d < tile_b)
    # Largest seq tile inside the budget (amortize ~0.35us per-step overhead).
    fit_s = [d for d in s_cands if h_tiles_bytes(tile_b, d) <= h_budget]
    tile_s = max(fit_s) if fit_s else s_cands[0]

    grid = (B // tile_b, S // tile_s)

    # ---- VMEM limit: what the BlockSpecs + scratch actually allocate ----
    lane = 128
    h_db = h_tiles_bytes(tile_b, tile_s)
    m_db = 2 * tile_b * 16 * max(tile_s, lane) * 2          # (tile_b,1,tile_s) bf16, padded
    w_buf = 2 * H * max(n_out, lane) * 4                    # fc W^T (lane-padded)
    small = 4 * (tile_b + 1) * 8 * lane * 4                 # bias + output tiles
    scratch = tile_b * 8 * (H + lane) * 4                   # f32 accumulators
    vmem_bytes = int(h_db + m_db + w_buf + small + scratch + (4 << 20))
    vmem_bytes = min(max(vmem_bytes, 16 << 20), int(0.9 * vmem_cap))

    cost = pl.CostEstimate(
        flops=2 * B * S * H + 2 * B * H * n_out,
        transcendentals=0,
        bytes_accessed=(B * S * H * itemsize      # hidden states (dominant)
                        + B * S * 2               # bf16 mask
                        + H * n_out * 4 + n_out * 4
                        + B * n_out * 4),
    )

    out = pl.pallas_call(
        meanpool_fc_kernel,
        out_shape=jax.ShapeDtypeStruct((B, 1, n_out), jnp.float32),
        grid_spec=pltpu.PrefetchScalarGridSpec(
            num_scalar_prefetch=0,
            grid=grid,
            in_specs=[
                pl.BlockSpec((tile_b, tile_s, H), lambda b, s: (b, s, 0)),   # hidden
                pl.BlockSpec((tile_b, 1, tile_s), lambda b, s: (b, 0, s)),   # mask
                pl.BlockSpec((H, n_out), lambda b, s: (0, 0)),               # fc W^T
                pl.BlockSpec((1, n_out), lambda b, s: (0, 0)),               # fc bias
            ],
            out_specs=pl.BlockSpec((tile_b, 1, n_out), lambda b, s: (b, 0, 0)),
            scratch_shapes=[
                pltpu.VMEM((tile_b, 1, H), jnp.float32),    # sum_emb accumulator
                pltpu.VMEM((tile_b, 1, 1), jnp.float32),    # sum_mask accumulator
            ],
        ),
        compiler_params=pltpu.CompilerParams(
            dimension_semantics=("parallel", "arbitrary"),
            vmem_limit_bytes=vmem_bytes,
        ),
        cost_estimate=cost,
    )(h, mask, w_t, bias)

    return out.reshape(B, n_out)


def reference_forward(last_hidden_state, attention_mask, fc_weight, fc_bias):
    """Pure-JAX reference mirroring the PyTorch MeanPooling + fc."""
    h = last_hidden_state.astype(jnp.float32)
    m = attention_mask.astype(jnp.float32)[..., None]            # (B, S, 1)
    sum_emb = jnp.sum(h * m, axis=1)                             # (B, H)
    sum_mask = jnp.maximum(jnp.sum(m, axis=1), 1e-9)             # (B, 1)
    mean_emb = sum_emb / sum_mask
    return jnp.dot(mean_emb, fc_weight.astype(jnp.float32).T,
                   preferred_element_type=jnp.float32) + fc_bias.astype(jnp.float32)


if __name__ == "__main__":
    initializer_range = 0.02  # matches self.config.initializer_range default
    key = jax.random.PRNGKey(0)

    # ---- Test 1: small shapes consistent with the module (f32, single tile) ----
    B, S, H, OUT = 2, 8, 32, 6
    k_h, k_w, k_h2, k_w2, k_len = jax.random.split(key, 5)

    last_hidden_state = jax.random.normal(k_h, (B, S, H), dtype=jnp.float32)
    lengths = jnp.array([8, 5], dtype=jnp.int32)
    attention_mask = (jnp.arange(S)[None, :] < lengths[:, None]).astype(jnp.int32)
    fc_weight = initializer_range * jax.random.normal(k_w, (OUT, H), dtype=jnp.float32)
    fc_bias = jnp.zeros((OUT,), dtype=jnp.float32)

    out = jax.block_until_ready(
        custom_model_forward(last_hidden_state, attention_mask, fc_weight, fc_bias))
    ref = reference_forward(last_hidden_state, attention_mask, fc_weight, fc_bias)
    assert out.shape == (B, OUT)
    assert jnp.allclose(out, ref, atol=1e-4, rtol=1e-4), "test1 mismatch"

    # ---- Test 2: bf16 hidden states, forced multi-tile grid (3 batch x 2 seq) ----
    B2, S2, H2 = 12, 256, 128
    last_hidden_state2 = jax.random.normal(
        k_h2, (B2, S2, H2), dtype=jnp.float32).astype(jnp.bfloat16)
    lengths2 = jax.random.randint(k_len, (B2,), minval=1, maxval=S2 + 1)
    attention_mask2 = (jnp.arange(S2)[None, :] < lengths2[:, None]).astype(jnp.int32)
    fc_weight2 = initializer_range * jax.random.normal(k_w2, (OUT, H2), dtype=jnp.float32)
    fc_bias2 = 0.01 * jnp.arange(OUT, dtype=jnp.float32)

    out2 = jax.block_until_ready(
        custom_model_forward(last_hidden_state2, attention_mask2, fc_weight2, fc_bias2,
                             max_tile_b=4, max_tile_s=128))
    ref2 = reference_forward(last_hidden_state2, attention_mask2, fc_weight2, fc_bias2)
    assert out2.shape == (B2, OUT)
    assert jnp.allclose(out2, ref2, atol=1e-3, rtol=1e-3), "test2 mismatch"

    # ---- Test 3: same inputs, auto-derived tiles (single big tile path) ----
    out3 = jax.block_until_ready(
        custom_model_forward(last_hidden_state2, attention_mask2, fc_weight2, fc_bias2))
    assert out3.shape == (B2, OUT)
    assert jnp.allclose(out3, ref2, atol=1e-3, rtol=1e-3), "test3 mismatch"

    print("KERNEL_OK")
</pallas_src>

<mosaic_0001>
module attributes {stable_mosaic.version = 11 : i64} {
  func.func @meanpool_fc_kernel(%arg0: i32, %arg1: i32, %arg2: memref<2x8x32xf32, #tpu.memory_space<vmem>>, %arg3: memref<2x1x8xbf16, #tpu.memory_space<vmem>>, %arg4: memref<32x6xf32, #tpu.memory_space<vmem>>, %arg5: memref<1x6xf32, #tpu.memory_space<vmem>>, %arg6: memref<2x1x6xf32, #tpu.memory_space<vmem>>, %arg7: memref<2x1x32xf32, #tpu.memory_space<vmem>>, %arg8: memref<2x1x1xf32, #tpu.memory_space<vmem>>) attributes {dimension_semantics = [#tpu.dimension_semantics<parallel>, #tpu.dimension_semantics<arbitrary>], iteration_bounds = array<i64: 1, 1>, scalar_prefetch = 0 : i64, scratch_operands = 2 : i64, tpu.core_type = #tpu.core_type<tc>, window_params = [{transform_indices = @transform_0, window_bounds = array<i64: 2, 8, 32>}, {transform_indices = @transform_1, window_bounds = array<i64: 2, 1, 8>}, {pipeline_mode = #tpu.pipeline_mode<synchronous>, transform_indices = @transform_2, window_bounds = array<i64: 32, 6>}, {pipeline_mode = #tpu.pipeline_mode<synchronous>, transform_indices = @transform_3, window_bounds = array<i64: 1, 6>}, {transform_indices = @transform_4, window_bounds = array<i64: 2, 1, 6>}]} {
    %c0_i32 = arith.constant 0 : i32
    %0 = arith.cmpi eq, %arg1, %c0_i32 : i32
    %1 = arith.extui %0 : i1 to i32
    %c0_i32_0 = arith.constant 0 : i32
    %2 = arith.cmpi ne, %1, %c0_i32_0 : i32
    scf.if %2 {
      %cst_21 = arith.constant 0.000000e+00 : f32
      %19 = vector.broadcast %cst_21 : f32 to vector<2x1x32xf32>
      %c0_22 = arith.constant 0 : index
      %c0_23 = arith.constant 0 : index
      %c0_24 = arith.constant 0 : index
      %20 = vector.load %arg7[%c0_22, %c0_23, %c0_24] : memref<2x1x32xf32, #tpu.memory_space<vmem>>, vector<2x1x32xf32>
      tpu.vector_store %arg7[%c0_22, %c0_23, %c0_24], %19 {strides = array<i32>} : memref<2x1x32xf32, #tpu.memory_space<vmem>>, vector<2x1x32xf32>,
      %cst_25 = arith.constant 0.000000e+00 : f32
      %21 = vector.broadcast %cst_25 : f32 to vector<2x1x1xf32>
      %c0_26 = arith.constant 0 : index
      %c0_27 = arith.constant 0 : index
      %c0_28 = arith.constant 0 : index
      %22 = vector.load %arg8[%c0_26, %c0_27, %c0_28] : memref<2x1x1xf32, #tpu.memory_space<vmem>>, vector<2x1x1xf32>
      tpu.vector_store %arg8[%c0_26, %c0_27, %c0_28], %21 {strides = array<i32>} : memref<2x1x1xf32, #tpu.memory_space<vmem>>, vector<2x1x1xf32>,
    } else {
    }
    %c0 = arith.constant 0 : index
    %c0_1 = arith.constant 0 : index
    %c0_2 = arith.constant 0 : index
    %3 = vector.load %arg2[%c0, %c0_1, %c0_2] : memref<2x8x32xf32, #tpu.memory_space<vmem>>, vector<2x8x32xf32>
    %c0_3 = arith.constant 0 : index
    %c0_4 = arith.constant 0 : index
    %c0_5 = arith.constant 0 : index
    %4 = vector.load %arg3[%c0_3, %c0_4, %c0_5] : memref<2x1x8xbf16, #tpu.memory_space<vmem>>, vector<2x1x8xbf16>
    %c0_6 = arith.constant 0 : index
    %c0_7 = arith.constant 0 : index
    %c0_8 = arith.constant 0 : index
    %5 = vector.load %arg7[%c0_6, %c0_7, %c0_8] : memref<2x1x32xf32, #tpu.memory_space<vmem>>, vector<2x1x32xf32>
    %6 = arith.extf %4 : vector<2x1x8xbf16> to vector<2x1x8xf32>
    "tpu.trace_start"() <{level = 10 : i32, message = "bqs,bsh->bqh"}> : () -> ()
    %cst = arith.constant dense<0.000000e+00> : vector<2x1x32xf32>
    %7 = tpu.matmul %6, %3, %cst {dimension_numbers = #tpu.dot_dimension_numbers<[2], [1], [1], [2], [0, 0, 0, 1, 1, 2], [0], [0]>} : vector<2x1x8xf32>, vector<2x8x32xf32>, vector<2x1x32xf32> -> vector<2x1x32xf32>
    "tpu.trace_stop"() : () -> ()
    %8 = arith.addf %5, %7 : vector<2x1x32xf32>
    %c0_9 = arith.constant 0 : index
    %c0_10 = arith.constant 0 : index
    %c0_11 = arith.constant 0 : index
    %9 = vector.load %arg7[%c0_9, %c0_10, %c0_11] : memref<2x1x32xf32, #tpu.memory_space<vmem>>, vector<2x1x32xf32>
    tpu.vector_store %arg7[%c0_9, %c0_10, %c0_11], %8 {strides = array<i32>} : memref<2x1x32xf32, #tpu.memory_space<vmem>>, vector<2x1x32xf32>,
    %c0_12 = arith.constant 0 : index
    %c0_13 = arith.constant 0 : index
    %c0_14 = arith.constant 0 : index
    %10 = vector.load %arg8[%c0_12, %c0_13, %c0_14] : memref<2x1x1xf32, #tpu.memory_space<vmem>>, vector<2x1x1xf32>
    %11 = arith.extf %4 : vector<2x1x8xbf16> to vector<2x1x8xf32>
    %cst_15 = arith.constant dense<0.000000e+00> : vector<2x1xf32>
    %12 = vector.multi_reduction <add>, %11, %cst_15 [2] : vector<2x1x8xf32> to vector<2x1xf32>
    %13 = vector.shape_cast %12 : vector<2x1xf32> to vector<2x1x1xf32>
    %14 = arith.addf %10, %13 : vector<2x1x1xf32>
    %c0_16 = arith.constant 0 : index
    %c0_17 = arith.constant 0 : index
    %c0_18 = arith.constant 0 : index
    %15 = vector.load %arg8[%c0_16, %c0_17, %c0_18] : memref<2x1x1xf32, #tpu.memory_space<vmem>>, vector<2x1x1xf32>
    tpu.vector_store %arg8[%c0_16, %c0_17, %c0_18], %14 {strides = array<i32>} : memref<2x1x1xf32, #tpu.memory_space<vmem>>, vector<2x1x1xf32>,
    %c0_i32_19 = arith.constant 0 : i32
    %16 = arith.cmpi eq, %arg1, %c0_i32_19 : i32
    %17 = arith.extui %16 : i1 to i32
    %c0_i32_20 = arith.constant 0 : i32
    %18 = arith.cmpi ne, %17, %c0_i32_20 : i32
    scf.if %18 {
      %c0_21 = arith.constant 0 : index
      %c0_22 = arith.constant 0 : index
      %c0_23 = arith.constant 0 : index
      %19 = vector.load %arg8[%c0_21, %c0_22, %c0_23] : memref<2x1x1xf32, #tpu.memory_space<vmem>>, vector<2x1x1xf32>
      %cst_24 = arith.constant 9.99999971E-10 : f32
      %20 = vector.broadcast %cst_24 : f32 to vector<2x1x1xf32>
      %21 = arith.maximumf %19, %20 : vector<2x1x1xf32>
      %c0_25 = arith.constant 0 : index
      %c0_26 = arith.constant 0 : index
      %c0_27 = arith.constant 0 : index
      %22 = vector.load %arg7[%c0_25, %c0_26, %c0_27] : memref<2x1x32xf32, #tpu.memory_space<vmem>>, vector<2x1x32xf32>
      %23 = vector.broadcast %21 : vector<2x1x1xf32> to vector<2x1x32xf32>
      %24 = arith.divf %22, %23 : vector<2x1x32xf32>
      %25 = vector.shape_cast %24 : vector<2x1x32xf32> to vector<2x32xf32>
      %c0_28 = arith.constant 0 : index
      %c0_29 = arith.constant 0 : index
      %26 = vector.load %arg4[%c0_28, %c0_29] : memref<32x6xf32, #tpu.memory_space<vmem>>, vector<32x6xf32>
      %cst_30 = arith.constant dense<0.000000e+00> : vector<2x6xf32>
      %27 = tpu.matmul %25, %26, %cst_30 {dimension_numbers = #tpu.dot_dimension_numbers<[1], [0], [0], [1], [0, 0, 1, 1], [], []>} : vector<2x32xf32>, vector<32x6xf32>, vector<2x6xf32> -> vector<2x6xf32>
      %c0_31 = arith.constant 0 : index
      %c0_32 = arith.constant 0 : index
      %28 = vector.load %arg5[%c0_31, %c0_32] : memref<1x6xf32, #tpu.memory_space<vmem>>, vector<1x6xf32>
      %29 = vector.broadcast %28 : vector<1x6xf32> to vector<2x6xf32>
      %30 = arith.addf %27, %29 : vector<2x6xf32>
      %31 = vector.shape_cast %30 : vector<2x6xf32> to vector<2x1x6xf32>
      %c0_33 = arith.constant 0 : index
      %c0_34 = arith.constant 0 : index
      %c0_35 = arith.constant 0 : index
      %32 = vector.load %arg6[%c0_33, %c0_34, %c0_35] : memref<2x1x6xf32, #tpu.memory_space<vmem>>, vector<2x1x6xf32>
      tpu.vector_store %arg6[%c0_33, %c0_34, %c0_35], %31 {strides = array<i32>} : memref<2x1x6xf32, #tpu.memory_space<vmem>>, vector<2x1x6xf32>,
    } else {
    }
    return
  }
  func.func @transform_0(%arg0: i32, %arg1: i32) -> (i32, i32, i32) {
    %c0_i32 = arith.constant 0 : i32
    %c0_i32_0 = arith.constant 0 : i32
    return %arg0, %arg1, %c0_i32 : i32, i32, i32
  }
  func.func @transform_1(%arg0: i32, %arg1: i32) -> (i32, i32, i32) {
    %c0_i32 = arith.constant 0 : i32
    %c0_i32_0 = arith.constant 0 : i32
    return %arg0, %c0_i32, %arg1 : i32, i32, i32
  }
  func.func @transform_2(%arg0: i32, %arg1: i32) -> (i32, i32) {
    %c0_i32 = arith.constant 0 : i32
    %c0_i32_0 = arith.constant 0 : i32
    %c0_i32_1 = arith.constant 0 : i32
    return %c0_i32, %c0_i32_0 : i32, i32
  }
  func.func @transform_3(%arg0: i32, %arg1: i32) -> (i32, i32) {
    %c0_i32 = arith.constant 0 : i32
    %c0_i32_0 = arith.constant 0 : i32
    %c0_i32_1 = arith.constant 0 : i32
    return %c0_i32, %c0_i32_0 : i32, i32
  }
  func.func @transform_4(%arg0: i32, %arg1: i32) -> (i32, i32, i32) {
    %c0_i32 = arith.constant 0 : i32
    %c0_i32_0 = arith.constant 0 : i32
    %c0_i32_1 = arith.constant 0 : i32
    return %arg0, %c0_i32, %c0_i32_0 : i32, i32, i32
  }
}

</mosaic_0001>

<bundles_post_ra>
// kernel: tpu_custom_call.1
= control target key start
LH: loop header
LB: loop body
LE: loop exit
PB: predicated region body
PF: predicated region fallthrough
CT: control target
= control target key end

     0   :  { %vm190_vm0 = vcmask 57344   ;;  %v447_v4 = vmov 0.0   ;;  %vm36_vm1 = vcmask 64512   ;;  %s521_s0 = inlined_call_operand.vmem [shape: f32[2,8,32], index: 0, kind: input, shape index: {}]   ;;  %s522_s1 = inlined_call_operand.vmem [shape: bf16[2,1,8], index: 1, kind: input, shape index: {}]   ;;  %s523_s2 = inlined_call_operand.vmem [shape: f32[32,6], index: 2, kind: input, shape index: {}]   ;;  %s524_s3 = inlined_call_operand.vmem [shape: f32[1,6], index: 3, kind: input, shape index: {}]   ;;  %s525_s4 = inlined_call_operand.hbm [shape: f32[2,1,6], index: 4, kind: output, shape index: {}]  }
   0x1   :  { %v30_v0 = vld [vmem:[%s522_s1] sm:$0x1]  ;;  %v31_v1 = vld [vmem:[%s522_s1 + $0x1] sm:$0x1]  ;;  %391 = vmatprep.subr.mxu1 %v447_v4  ;;  %v29_v6 = vld [vmem:[%s521_s0 + $0x8] sm:$0xff]  ;;  %401 = vmatprep.subr.mxu0 %v447_v4 }
   0x2   :  { %v34_v2 = vunpack.c.l.bf16 %v30_v0  ;;  %v35_v3 = vunpack.c.l.bf16 %v31_v1  ;;  %v28_v5 = vld [vmem:[%s521_s0] sm:$0xff] }
   0x3   :  { %9 = vsyncpa [#allocation5], 0  ;;  %392 = vmatpush3.msra.mxu1 %v28_v5  ;;  %vm448_vm2 = vmmov 0   ;;  %vm25_vm3 = vcmask 0   ;;  %v449_v9 = vmov 0   ;;  %vm22_vm4 = vcmask 253952  }
   0x4   :  { %393 = vmatprep.mubr.msk.f32.mxu1 %vm448_vm2, %v447_v4  ;;  %v191_v7 = vsel %vm190_vm0, %v34_v2, 0.0  ;;  %396 = vmatprep.subr.mxu1 %v447_v4  ;;  %v194_v8 = vsel %vm190_vm0, %v35_v3, 0.0  ;;  %26 = vst.msk [vmem:[#allocation3] sm:$0x1] %vm25_vm3, %v447_v4  ;;  %27 = vst.msk [vmem:[#allocation3 + $0x1] sm:$0x1] %vm25_vm3, %v447_v4  ;;  %v216_v32 = vlaneseq }
   0x5   :  { %394 = vmatmul.mubr.msk.f32.vlgmr.msra.gmra.mxu1 %vm36_vm1, %v34_v2  ;;  %192 = vadd.xlane.f32.xlu0 %v191_v7  ;;  %23 = vst.msk [vmem:[#allocation2] sm:$0x1] %vm22_vm4, %v447_v4  ;;  %24 = vst.msk [vmem:[#allocation2 + $0x1] sm:$0x1] %vm22_vm4, %v447_v4  ;;  %v236_v20 = vld [vmem:[%s523_s2 + $0x18] sm:$0xff]  ;;  %v235_v21 = vld [vmem:[%s523_s2 + $0x10] sm:$0xff] }
   0x6   :  { %397 = vmatpush3.msra.mxu1 %v29_v6  ;;  %398 = vmatprep.mubr.msk.f32.mxu1 %vm448_vm2, %v447_v4  ;;  %v234_v22 = vld [vmem:[%s523_s2 + $0x8] sm:$0xff]  ;;  %v233_v23 = vld [vmem:[%s523_s2] sm:$0xff]  ;;  %v217_v33 = vshrl.u32 %v216_v32, 7  ;;  %v450_v39 = vmov 1966171168   ;;  %vm261_vm5 = vcmask 261120  }
   0x7   :  { %409 = vmatprep.mubr.msk.f32.mxu0 %vm448_vm2, %v447_v4  ;;  %419 = vset.pattern.permute.xlu1 %v449_v9  ;;  %v248_v40 = vunpack.c.l.s4 %v450_v39  ;;  %v380_v52 = vld [vmem:[%s524_s3] ss:$0 sm:$0xff]  ;;  %s451_s30 = smov [#allocation4]   ;;  %vm359_vm6 = vcmask 40960  }
   0x8   :  { %420 = vset.pattern.permute.xlu0 %v449_v9  ;;  %402 = vmatpush3.msra.mxu0 %v236_v20  ;;  %v218_v34 = vsub.s32 0, %v217_v33  ;;  %s367_s5 = sshll.u32 %s451_s30, 4  ;;  %s368_s5 = int_to_ptr.vmem [resolvable:$true] %s367_s5 }
   0x9   :  { %399 = vmatmul.mubr.msk.f32.vlgmr.msra.gmra.mxu1 %vm36_vm1, %v35_v3  ;;  %195 = vadd.xlane.f32.xlu0 %v194_v8  ;;  %v249_v41 = vunpack.c.0.s8 %v248_v40  ;;  %s425_s6 = scalar_lea.vmem %s368_s5, 32  ;;  %p430_p1 = scmp.lt.s32.totalorder %s368_s5, %s368_s5 }
   0xa   :  { %403 = vmatprep.subr.mxu0 %v447_v4  ;;  %p426_p0 = scmp.ne.s32.totalorder %s368_s5, %s425_s6  ;;  %p431_p2 = scmp.lt.s32.totalorder %s425_s6, %s425_s6 }
   0xb   :  { %v188_v10 = vld [vmem:[#allocation3] sm:$0x1]  ;;  %v189_v13 = vld [vmem:[#allocation3 + $0x1] sm:$0x1]  ;;  %404 = vmatpush3.msra.mxu0 %v235_v21  ;;  %v252_v46 = vsub.s32 %v249_v41, %v217_v33 }
   0xc   :  { %405 = vmatprep.subr.mxu0 %v447_v4  ;;  %v32_v24 = vld [vmem:[#allocation2] sm:$0x1]  ;;  %v33_v28 = vld [vmem:[#allocation2 + $0x1] sm:$0x1]  ;;  %p432_p3 = por %p431_p2, %p430_p1 }
   0xd   :  { %406 = vmatpush3.msra.mxu0 %v234_v22 }
   0xe   :  { %407 = vmatprep.subr.mxu0 %v447_v4  ;;  %p433_p4 = pnand %p432_p3, %p426_p0 }
   0xf   :  { %408 = vmatpush3.msra.mxu0 %v233_v23 }
  0x8e   :  { %v193_v11 = vpop.xlane.xlu0 %192 }
  0x8f   :  { %v197_v12 = vadd.f32 %v193_v11, %v188_v10 }
  0x91   :  { %200 = vst.msk [vmem:[#allocation3] sm:$0x1] %vm25_vm3, %v197_v12 }
  0x92   :  { %v196_v14 = vpop.xlane.xlu0 %195 }
  0x93   :  { %v198_v15 = vadd.f32 %v196_v14, %v189_v13 }
  0x95   :  { %201 = vst.msk [vmem:[#allocation3 + $0x1] sm:$0x1] %vm25_vm3, %v198_v15 }
  0x98   :  { %v205_v16 = vld [vmem:[#allocation3] sm:$0x1] }
  0x99   :  { %v207_v17 = vmax.f32 %v205_v16, 1e-09 }
  0x9b   :  { %213 = vperm.xlu1 %419, %v207_v17  }
  0x9c   :  { %v206_v18 = vld [vmem:[#allocation3 + $0x1] sm:$0x1] }
  0x9d   :  { %v208_v19 = vmax.f32 %v206_v18, 1e-09 }
  0x9f   :  { %222 = vperm.xlu1 %419, %v208_v19  }
  0xc5   :  { %v106_v25 = vpop.f32.mrf.mxu1 }
  0xc6   :  { %v183_v26 = vadd.f32 %v106_v25, %v32_v24 }
  0xc7   :  { %v395_v27 = vpop.f32.mrf.mxu1 }
  0xc8   :  { %186 = vst.msk [vmem:[#allocation2] sm:$0x1] %vm22_vm4, %v183_v26 }
  0xc9   :  { %v179_v29 = vpop.f32.mrf.mxu1 }
  0xca   :  { %v184_v30 = vadd.f32 %v179_v29, %v33_v28 }
  0xcb   :  { %v400_v31 = vpop.f32.mrf.mxu1 }
  0xcc   :  { %187 = vst.msk [vmem:[#allocation2 + $0x1] sm:$0x1] %vm22_vm4, %v184_v30 }
  0xcf   :  { %v209_v43 = vld [vmem:[#allocation2] sm:$0x1] }
  0xd3   :  { %v210_v44 = vld [vmem:[#allocation2 + $0x1] sm:$0x1] }
 0x116   :  { %v214_v35 = vpop.permute.xlu1 %213 }
 0x117   :  { %v219_v36 = vrot.slane %v214_v35, %v218_v34 }
 0x119   :  { %421 = vrcp.f32 %v219_v36 }
 0x11a   :  { %v223_v37 = vpop.permute.xlu1 %222 }
 0x11b   :  { %v228_v38 = vrot.slane %v223_v37, %v218_v34 }
 0x11d   :  { %423 = vrcp.f32 %v228_v38 }
 0x126   :  { %v422_v42 = vpop.eup %421 }
 0x127   :  { %v230_v47 = vmul.f32 %v422_v42, %v209_v43 }
 0x12a   :  { %v424_v45 = vpop.eup %423 }
 0x12b   :  { %v232_v48 = vmul.f32 %v424_v45, %v210_v44 }
 0x12d   :  { %v246_v49 = vcombine.low %v230_v47, %v232_v48 }
 0x12f   :  { %v253_v50 = vrot.slane %v246_v49, %v252_v46 }
 0x131   :  { %v260_v51 = vrot.slane %v253_v50, %v252_v46 }
 0x133   :  { %410 = vmatmul.mubr.msk.f32.vlgmr.msra.gmra.mxu0 %vm261_vm5, %v260_v51 }
 0x1f3   :  { %v330_v53 = vpop.f32.mrf.mxu0 }
 0x1f4   :  { %v331_v54 = vadd.f32 %v380_v52, %v330_v53 }
 0x1f5   :  { %v411_v55 = vpop.f32.mrf.mxu0 }
 0x1f6   :  { %v341_v56 = vrot.slane %v331_v54, %v252_v46 }
 0x1f8   :  { %v342_v57 = vcombine.high %v341_v56, %v341_v56  ;;  %v349_v58 = vrot.slane %v341_v56, %v252_v46 }
 0x1fa   :  { %v356_v59 = vrot.slane %v342_v57, %v252_v46  ;;  %360 = vst.msk [vmem:[#allocation4] sm:$0x1] %vm359_vm6, %v349_v58 }
 0x1fc   :  { %361 = vst.msk [vmem:[#allocation4 + $0x1] sm:$0x1] %vm359_vm6, %v356_v59 }
 0x1fd   :  { %436 = shalt.err (!%p433_p4)
}
 0x1fe   :  { %s452_s3 = smov 16   ;;  %s453_s7 = smov 1  }
 0x1ff   :  { %373 = dma.vmem_to_hbm [thread:$0]  %s368_s5, 32, %s525_s4, [#allocation5], %s452_s3, %s452_s3, %s453_s7  }
 0x200   :  { %445 = dma.done.wait [#allocation5], 32  }
 0x201   :  { %446 = vsyncadd [#allocation5], 4294967264 }
 0x202   :  { %377 = vsyncpa [#allocation5], 1 }

</bundles_post_ra>
